<compile_context>
chip_gen: v7x
topology: tpu7x:2x2x1
jax: 0.10.0
libtpu: 0.0.40
codegen_flags: <defaults>
</compile_context>

<pallas_src>
import jax
import jax.numpy as jnp
from jax.experimental import pallas as pl
from jax.experimental.pallas import tpu as pltpu

EPS = 1e-5
_BLOCK_BUDGET_BYTES = 2 * 1024 * 1024   # ~2 MiB per in/out block (VMEM-budgeted tiles)


def _biasfree_ln_kernel(x_ref, w_ref, o_ref):
    """One row-tile of BiasFree LayerNorm.

    x_ref : (tile_rows, C)   input tile
    w_ref : (1, C)           per-channel scale (broadcast over rows)
    o_ref : (tile_rows, C)   output tile
    """
    x = x_ref[...].astype(jnp.float32)                  # f32 accumulation
    inv_c = 1.0 / x.shape[-1]
    s1 = jnp.sum(x, axis=-1, keepdims=True)             # XLU cross-lane reduce
    s2 = jnp.sum(x * x, axis=-1, keepdims=True)         # XLU (pipelines with s1)
    mean = s1 * inv_c
    var = jnp.maximum(s2 * inv_c - mean * mean, 0.0)    # single-pass biased variance
    inv = jax.lax.rsqrt(var + EPS)                      # EUP slot (cheap)
    w = w_ref[...].astype(jnp.float32)
    o_ref[...] = ((x * inv) * w).astype(o_ref.dtype)    # VPU scale, cast on store


def _pick_tile_rows(rows, row_width, itemsize, block_rows=None):
    """Largest row tile within the VMEM block budget (multiple of 8 unless full)."""
    if block_rows is None:
        block_rows = max(8, _BLOCK_BUDGET_BYTES // (row_width * itemsize))
    tile = min(int(block_rows), rows)
    if tile < rows:
        tile = max(8, (tile // 8) * 8)   # sublane granularity for partial tiles
    return tile


def biasfree_layernorm(x, weight, *, block_rows=None):
    """BiasFree LayerNorm over the last dim.  x: (..., C), weight: (C,)."""
    orig_shape = x.shape
    C = orig_shape[-1]
    assert weight.shape == (C,), weight.shape

    x2d = x.reshape(-1, C)                 # contiguous reshape: free, no HBM copy
    rows = x2d.shape[0]
    itemsize = jnp.dtype(x.dtype).itemsize

    tile = _pick_tile_rows(rows, C, itemsize, block_rows)
    grid = (pl.cdiv(rows, tile),)          # ragged last block: no pad, no slice

    block_bytes = tile * C * itemsize
    # ~2x(in + out) double-buffered blocks + slack for in-kernel f32 temporaries.
    vmem_limit = int(min(64 * 1024 * 1024, 4 * block_bytes + 8 * 1024 * 1024))

    out = pl.pallas_call(
        _biasfree_ln_kernel,
        out_shape=jax.ShapeDtypeStruct((rows, C), x.dtype),
        grid_spec=pltpu.PrefetchScalarGridSpec(
            num_scalar_prefetch=0,
            grid=grid,
            in_specs=[
                pl.BlockSpec((tile, C), lambda i: (i, 0)),
                pl.BlockSpec((1, C), lambda i: (0, 0)),     # weight: constant block
            ],
            out_specs=pl.BlockSpec((tile, C), lambda i: (i, 0)),
        ),
        compiler_params=pltpu.CompilerParams(
            dimension_semantics=("parallel",),   # megacore / v7x dual-TC sharding
            vmem_limit_bytes=vmem_limit,         # v5e scoped default is only 16 MiB
        ),
    )(x2d, weight.reshape(1, C))
    return out.reshape(orig_shape)


def _reference(x, weight):
    """Plain-JAX reference matching the PyTorch module (unbiased=False)."""
    var = jnp.var(x, axis=-1, keepdims=True)
    return x / jnp.sqrt(var + EPS) * weight


if __name__ == "__main__":
    key = jax.random.PRNGKey(0)
    k_x, k_w, k_x3 = jax.random.split(key, 3)

    # Typical res2tormer usage: x rearranged to (B, H*W, C); normalized_shape = C.
    B, L, C = 2, 64, 48
    x = jax.random.normal(k_x, (B, L, C), dtype=jnp.float32)
    w = 1.0 + 0.1 * jax.random.normal(k_w, (C,), dtype=jnp.float32)
    ref = _reference(x, w)

    # 1) Default VMEM-budgeted tiling (single big block here).
    out = jax.block_until_ready(biasfree_layernorm(x, w))
    assert out.shape == x.shape, out.shape
    assert jnp.allclose(out, ref, atol=1e-5, rtol=1e-5), "mismatch (default tiling)"

    # 2) Multi-step grid with a ragged last block (128 rows, tile 48 -> 3 steps).
    out2 = jax.block_until_ready(biasfree_layernorm(x, w, block_rows=48))
    assert jnp.allclose(out2, ref, atol=1e-5, rtol=1e-5), "mismatch (ragged blocks)"

    # 3) Row count not a multiple of 8 (ragged last block, no padding anywhere).
    x3 = jax.random.normal(k_x3, (3, 7, C), dtype=jnp.float32)
    out3 = jax.block_until_ready(biasfree_layernorm(x3, w, block_rows=8))
    assert jnp.allclose(out3, _reference(x3, w), atol=1e-5, rtol=1e-5), \
        "mismatch (non-multiple-of-8 rows)"

    # 4) bf16 I/O (stats still accumulated in f32 inside the kernel).
    xb = x.astype(jnp.bfloat16)
    outb = jax.block_until_ready(biasfree_layernorm(xb, w))
    assert outb.dtype == jnp.bfloat16
    refb = _reference(xb.astype(jnp.float32), w)
    assert jnp.allclose(outb.astype(jnp.float32), refb, atol=2e-2, rtol=2e-2), \
        "mismatch (bf16 I/O)"

    print("KERNEL_OK")
</pallas_src>

<mosaic_0001>
module attributes {stable_mosaic.version = 11 : i64} {
  func.func @_biasfree_ln_kernel(%arg0: i32, %arg1: memref<128x48xf32, #tpu.memory_space<vmem>>, %arg2: memref<1x48xf32, #tpu.memory_space<vmem>>, %arg3: memref<128x48xf32, #tpu.memory_space<vmem>>) attributes {dimension_semantics = [#tpu.dimension_semantics<parallel>], iteration_bounds = array<i64: 1>, scalar_prefetch = 0 : i64, scratch_operands = 0 : i64, tpu.core_type = #tpu.core_type<tc>, window_params = [{transform_indices = @transform_0, window_bounds = array<i64: 128, 48>}, {pipeline_mode = #tpu.pipeline_mode<synchronous>, transform_indices = @transform_1, window_bounds = array<i64: 1, 48>}, {transform_indices = @transform_2, window_bounds = array<i64: 128, 48>}]} {
    %c0 = arith.constant 0 : index
    %c0_0 = arith.constant 0 : index
    %0 = vector.load %arg1[%c0, %c0_0] : memref<128x48xf32, #tpu.memory_space<vmem>>, vector<128x48xf32>
    %cst = arith.constant dense<0.000000e+00> : vector<128xf32>
    %1 = vector.multi_reduction <add>, %0, %cst [1] : vector<128x48xf32> to vector<128xf32>
    %2 = vector.shape_cast %1 : vector<128xf32> to vector<128x1xf32>
    %3 = arith.mulf %0, %0 : vector<128x48xf32>
    %cst_1 = arith.constant dense<0.000000e+00> : vector<128xf32>
    %4 = vector.multi_reduction <add>, %3, %cst_1 [1] : vector<128x48xf32> to vector<128xf32>
    %5 = vector.shape_cast %4 : vector<128xf32> to vector<128x1xf32>
    %cst_2 = arith.constant 0.020833334 : f32
    %6 = vector.broadcast %cst_2 : f32 to vector<128x1xf32>
    %7 = arith.mulf %2, %6 : vector<128x1xf32>
    %cst_3 = arith.constant 0.020833334 : f32
    %8 = vector.broadcast %cst_3 : f32 to vector<128x1xf32>
    %9 = arith.mulf %5, %8 : vector<128x1xf32>
    %10 = arith.mulf %7, %7 : vector<128x1xf32>
    %11 = arith.subf %9, %10 : vector<128x1xf32>
    %cst_4 = arith.constant 0.000000e+00 : f32
    %12 = vector.broadcast %cst_4 : f32 to vector<128x1xf32>
    %13 = arith.maximumf %11, %12 : vector<128x1xf32>
    %cst_5 = arith.constant 9.99999974E-6 : f32
    %14 = vector.broadcast %cst_5 : f32 to vector<128x1xf32>
    %15 = arith.addf %13, %14 : vector<128x1xf32>
    %16 = math.rsqrt %15 : vector<128x1xf32>
    %c0_6 = arith.constant 0 : index
    %c0_7 = arith.constant 0 : index
    %17 = vector.load %arg2[%c0_6, %c0_7] : memref<1x48xf32, #tpu.memory_space<vmem>>, vector<1x48xf32>
    %18 = vector.broadcast %16 : vector<128x1xf32> to vector<128x48xf32>
    %19 = arith.mulf %0, %18 : vector<128x48xf32>
    %20 = vector.broadcast %17 : vector<1x48xf32> to vector<128x48xf32>
    %21 = arith.mulf %19, %20 : vector<128x48xf32>
    %c0_8 = arith.constant 0 : index
    %c0_9 = arith.constant 0 : index
    %22 = vector.load %arg3[%c0_8, %c0_9] : memref<128x48xf32, #tpu.memory_space<vmem>>, vector<128x48xf32>
    tpu.vector_store %arg3[%c0_8, %c0_9], %21 {strides = array<i32>} : memref<128x48xf32, #tpu.memory_space<vmem>>, vector<128x48xf32>,
    return
  }
  func.func @transform_0(%arg0: i32) -> (i32, i32) {
    %c0_i32 = arith.constant 0 : i32
    %c0_i32_0 = arith.constant 0 : i32
    return %arg0, %c0_i32 : i32, i32
  }
  func.func @transform_1(%arg0: i32) -> (i32, i32) {
    %c0_i32 = arith.constant 0 : i32
    %c0_i32_0 = arith.constant 0 : i32
    %c0_i32_1 = arith.constant 0 : i32
    return %c0_i32, %c0_i32_0 : i32, i32
  }
  func.func @transform_2(%arg0: i32) -> (i32, i32) {
    %c0_i32 = arith.constant 0 : i32
    %c0_i32_0 = arith.constant 0 : i32
    return %arg0, %c0_i32 : i32, i32
  }
}

</mosaic_0001>

<bundles_post_ra>
// kernel: tpu_custom_call.1
= control target key start
LH: loop header
LB: loop body
LE: loop exit
PB: predicated region body
PF: predicated region fallthrough
CT: control target
= control target key end

     0   :  { %vm27_vm0 = vcmask 392192   ;;  %s632_s0 = inlined_call_operand.vmem [shape: f32[128,48], index: 0, kind: input, shape index: {}]   ;;  %s633_s1 = inlined_call_operand.vmem [shape: f32[1,48], index: 1, kind: input, shape index: {}]   ;;  %s634_s2 = inlined_call_operand.vmem [shape: f32[128,48], index: 2, kind: output, shape index: {}]  }
   0x1   :  { %v362_v0 = vld [vmem:[%s632_s0 + $0x10] sm:$0xff]  ;;  %v367_v1 = vld [vmem:[%s632_s0] sm:$0xff]  ;;  %v372_v2 = vld [vmem:[%s632_s0 + $0x18] sm:$0xff] }
   0x2   :  { %v34_v3 = vsel %vm27_vm0, %v362_v0, 0.0  ;;  %v28_v4 = vsel %vm27_vm0, %v367_v1, 0.0  ;;  %v381_v5 = vld [vmem:[%s632_s0 + $0x8] sm:$0xff]  ;;  %v37_v6 = vsel %vm27_vm0, %v372_v2, 0.0  ;;  %v395_v9 = vld [vmem:[%s632_s0 + $0x20] sm:$0xff]  ;;  %v404_v12 = vld [vmem:[%s632_s0 + $0x38] sm:$0xff]  ;;  %v76_v33 = vmul.f32 %v367_v1, %v367_v1 }
   0x3   :  { %35 = vadd.xlane.f32.xlu1 %v34_v3  ;;  %29 = vadd.xlane.f32.xlu0 %v28_v4  ;;  %v31_v7 = vsel %vm27_vm0, %v381_v5, 0.0  ;;  %v390_v8 = vld [vmem:[%s632_s0 + $0x28] sm:$0xff]  ;;  %v40_v11 = vsel %vm27_vm0, %v395_v9, 0.0  ;;  %v409_v13 = vld [vmem:[%s632_s0 + $0x30] sm:$0xff]  ;;  %v49_v14 = vsel %vm27_vm0, %v404_v12, 0.0  ;;  %v423_v17 = vld [vmem:[%s632_s0 + $0x40] sm:$0xff]  ;;  %v77_v32 = vmul.f32 %v381_v5, %v381_v5 }
   0x4   :  { %v43_v10 = vsel %vm27_vm0, %v390_v8, 0.0  ;;  %v46_v15 = vsel %vm27_vm0, %v409_v13, 0.0  ;;  %v418_v16 = vld [vmem:[%s632_s0 + $0x48] sm:$0xff]  ;;  %v52_v19 = vsel %vm27_vm0, %v423_v17, 0.0  ;;  %v432_v20 = vld [vmem:[%s632_s0 + $0x58] sm:$0xff]  ;;  %v437_v21 = vld [vmem:[%s632_s0 + $0x50] sm:$0xff]  ;;  %v79_v36 = vmul.f32 %v372_v2, %v372_v2 }
   0x5   :  { %v55_v18 = vsel %vm27_vm0, %v418_v16, 0.0  ;;  %v61_v22 = vsel %vm27_vm0, %v432_v20, 0.0  ;;  %v58_v23 = vsel %vm27_vm0, %v437_v21, 0.0  ;;  %v446_v24 = vld [vmem:[%s632_s0 + $0x68] sm:$0xff]  ;;  %v451_v25 = vld [vmem:[%s632_s0 + $0x60] sm:$0xff]  ;;  %v460_v28 = vld [vmem:[%s632_s0 + $0x78] sm:$0xff]  ;;  %v78_v37 = vmul.f32 %v362_v0, %v362_v0 }
   0x6   :  { %v67_v26 = vsel %vm27_vm0, %v446_v24, 0.0  ;;  %v64_v27 = vsel %vm27_vm0, %v451_v25, 0.0  ;;  %v465_v29 = vld [vmem:[%s632_s0 + $0x70] sm:$0xff]  ;;  %v73_v30 = vsel %vm27_vm0, %v460_v28, 0.0  ;;  %v95_v34 = vsel %vm27_vm0, %v77_v32, 0.0 }
   0x7   :  { %38 = vadd.xlane.f32.xlu1 %v37_v6  ;;  %32 = vadd.xlane.f32.xlu0 %v31_v7  ;;  %v70_v31 = vsel %vm27_vm0, %v465_v29, 0.0  ;;  %v92_v35 = vsel %vm27_vm0, %v76_v33, 0.0  ;;  %v101_v38 = vsel %vm27_vm0, %v79_v36, 0.0  ;;  %v98_v39 = vsel %vm27_vm0, %v78_v37, 0.0 }
   0x8   :  { %v81_v40 = vmul.f32 %v390_v8, %v390_v8  ;;  %v80_v41 = vmul.f32 %v395_v9, %v395_v9  ;;  %v83_v44 = vmul.f32 %v404_v12, %v404_v12  ;;  %v82_v45 = vmul.f32 %v409_v13, %v409_v13 }
   0x9   :  { %v85_v48 = vmul.f32 %v418_v16, %v418_v16  ;;  %v84_v49 = vmul.f32 %v423_v17, %v423_v17  ;;  %v87_v52 = vmul.f32 %v432_v20, %v432_v20  ;;  %v86_v53 = vmul.f32 %v437_v21, %v437_v21 }
   0xa   :  { %v107_v42 = vsel %vm27_vm0, %v81_v40, 0.0  ;;  %v104_v43 = vsel %vm27_vm0, %v80_v41, 0.0  ;;  %v113_v46 = vsel %vm27_vm0, %v83_v44, 0.0  ;;  %v110_v47 = vsel %vm27_vm0, %v82_v45, 0.0 }
   0xb   :  { %44 = vadd.xlane.f32.xlu1 %v43_v10  ;;  %41 = vadd.xlane.f32.xlu0 %v40_v11  ;;  %v119_v50 = vsel %vm27_vm0, %v85_v48, 0.0  ;;  %v116_v51 = vsel %vm27_vm0, %v84_v49, 0.0  ;;  %v125_v54 = vsel %vm27_vm0, %v87_v52, 0.0  ;;  %v122_v55 = vsel %vm27_vm0, %v86_v53, 0.0 }
   0xc   :  { %v89_v56 = vmul.f32 %v446_v24, %v446_v24  ;;  %v88_v57 = vmul.f32 %v451_v25, %v451_v25  ;;  %v91_v60 = vmul.f32 %v460_v28, %v460_v28  ;;  %v90_v61 = vmul.f32 %v465_v29, %v465_v29 }
   0xe   :  { %v131_v58 = vsel %vm27_vm0, %v89_v56, 0.0  ;;  %v128_v59 = vsel %vm27_vm0, %v88_v57, 0.0  ;;  %v137_v62 = vsel %vm27_vm0, %v91_v60, 0.0  ;;  %v134_v63 = vsel %vm27_vm0, %v90_v61, 0.0 }
   0xf   :  { %50 = vadd.xlane.f32.xlu1 %v49_v14  ;;  %47 = vadd.xlane.f32.xlu0 %v46_v15 }
  0x13   :  { %56 = vadd.xlane.f32.xlu1 %v55_v18  ;;  %53 = vadd.xlane.f32.xlu0 %v52_v19 }
  0x17   :  { %62 = vadd.xlane.f32.xlu1 %v61_v22  ;;  %59 = vadd.xlane.f32.xlu0 %v58_v23 }
  0x1b   :  { %68 = vadd.xlane.f32.xlu1 %v67_v26  ;;  %65 = vadd.xlane.f32.xlu0 %v64_v27 }
  0x1f   :  { %74 = vadd.xlane.f32.xlu1 %v73_v30  ;;  %71 = vadd.xlane.f32.xlu0 %v70_v31 }
  0x23   :  { %96 = vadd.xlane.f32.xlu1 %v95_v34  ;;  %93 = vadd.xlane.f32.xlu0 %v92_v35 }
  0x27   :  { %102 = vadd.xlane.f32.xlu1 %v101_v38  ;;  %99 = vadd.xlane.f32.xlu0 %v98_v39 }
  0x2b   :  { %108 = vadd.xlane.f32.xlu1 %v107_v42  ;;  %105 = vadd.xlane.f32.xlu0 %v104_v43 }
  0x2f   :  { %114 = vadd.xlane.f32.xlu1 %v113_v46  ;;  %111 = vadd.xlane.f32.xlu0 %v110_v47 }
  0x33   :  { %120 = vadd.xlane.f32.xlu1 %v119_v50  ;;  %117 = vadd.xlane.f32.xlu0 %v116_v51 }
  0x37   :  { %126 = vadd.xlane.f32.xlu1 %v125_v54  ;;  %123 = vadd.xlane.f32.xlu0 %v122_v55 }
  0x3b   :  { %132 = vadd.xlane.f32.xlu1 %v131_v58  ;;  %129 = vadd.xlane.f32.xlu0 %v128_v59 }
  0x3f   :  { %138 = vadd.xlane.f32.xlu1 %v137_v62  ;;  %135 = vadd.xlane.f32.xlu0 %v134_v63 }
  0x90   :  { %v36_v3 = vpop.xlane.xlu1 %35  ;;  %v30_v4 = vpop.xlane.xlu0 %29 }
  0x91   :  { %v140_v32 = vmul.f32 0.020833334, %v30_v4  ;;  %v142_v34 = vmul.f32 0.020833334, %v36_v3 }
  0x93   :  { %v172_v38 = vmul.f32 %v140_v32, %v140_v32  ;;  %v174_v44 = vmul.f32 %v142_v34, %v142_v34 }
  0x94   :  { %v39_v6 = vpop.xlane.xlu1 %38  ;;  %v33_v7 = vpop.xlane.xlu0 %32 }
  0x95   :  { %v141_v33 = vmul.f32 0.020833334, %v33_v7  ;;  %v143_v35 = vmul.f32 0.020833334, %v39_v6 }
  0x97   :  { %v173_v39 = vmul.f32 %v141_v33, %v141_v33  ;;  %v175_v45 = vmul.f32 %v143_v35, %v143_v35 }
  0x98   :  { %v45_v10 = vpop.xlane.xlu1 %44  ;;  %v42_v11 = vpop.xlane.xlu0 %41 }
  0x99   :  { %v145_v46 = vmul.f32 0.020833334, %v45_v10  ;;  %v144_v53 = vmul.f32 0.020833334, %v42_v11 }
  0x9b   :  { %v177_v58 = vmul.f32 %v145_v46, %v145_v46  ;;  %v176_v6 = vmul.f32 %v144_v53, %v144_v53 }
  0x9c   :  { %v51_v14 = vpop.xlane.xlu1 %50  ;;  %v48_v15 = vpop.xlane.xlu0 %47 }
  0x9d   :  { %v147_v59 = vmul.f32 0.020833334, %v51_v14  ;;  %v146_v60 = vmul.f32 0.020833334, %v48_v15 }
  0x9f   :  { %v179_v11 = vmul.f32 %v147_v59, %v147_v59  ;;  %v178_v34 = vmul.f32 %v146_v60, %v146_v60 }
  0xa0   :  { %v57_v18 = vpop.xlane.xlu1 %56  ;;  %v54_v19 = vpop.xlane.xlu0 %53 }
  0xa1   :  { %v149_v35 = vmul.f32 0.020833334, %v57_v18 }
  0xa4   :  { %v63_v22 = vpop.xlane.xlu1 %62  ;;  %v60_v23 = vpop.xlane.xlu0 %59 }
  0xa8   :  { %v519_v26 = vpop.xlane.xlu1 %68  ;;  %v521_v27 = vpop.xlane.xlu0 %65 }
  0xa9   :  { %v152_v18 = vmul.f32 0.020833334, %v521_v27 }
  0xac   :  { %v523_v30 = vpop.xlane.xlu1 %74  ;;  %v525_v31 = vpop.xlane.xlu0 %71 }
  0xb0   :  { %v97_v36 = vpop.xlane.xlu1 %96  ;;  %v94_v37 = vpop.xlane.xlu0 %93 }
  0xb1   :  { %v157_v40 = vmul.f32 0.020833334, %v97_v36  ;;  %v156_v41 = vmul.f32 0.020833334, %v94_v37 }
  0xb3   :  { %v189_v42 = vsub.f32 %v157_v40, %v173_v39  ;;  %v188_v43 = vsub.f32 %v156_v41, %v172_v38  ;;  %v148_v40 = vmul.f32 0.020833334, %v54_v19  ;;  %v151_v41 = vmul.f32 0.020833334, %v63_v22 }
  0xb4   :  { %v103_v47 = vpop.xlane.xlu1 %102  ;;  %v100_v48 = vpop.xlane.xlu0 %99 }
  0xb5   :  { %v205_v49 = vmax.f32 %v189_v42, 0.0  ;;  %v204_v50 = vmax.f32 %v188_v43, 0.0  ;;  %v159_v51 = vmul.f32 0.020833334, %v103_v47  ;;  %v158_v52 = vmul.f32 0.020833334, %v100_v48 }
  0xb6   :  { %v150_v43 = vmul.f32 0.020833334, %v60_v23  ;;  %v181_v47 = vmul.f32 %v149_v35, %v149_v35  ;;  %v153_v48 = vmul.f32 0.020833334, %v519_v26  ;;  %v180_v19 = vmul.f32 %v148_v40, %v148_v40 }
  0xb7   :  { %v221_v54 = vadd.f32 1e-05, %v205_v49  ;;  %v220_v55 = vadd.f32 1e-05, %v204_v50  ;;  %v191_v56 = vsub.f32 %v159_v51, %v175_v45  ;;  %v190_v57 = vsub.f32 %v158_v52, %v174_v44 }
  0xb8   :  { %v109_v61 = vpop.xlane.xlu1 %108  ;;  %v106_v62 = vpop.xlane.xlu0 %105  ;;  %v183_v22 = vmul.f32 %v151_v41, %v151_v41  ;;  %v185_v60 = vmul.f32 %v153_v48, %v153_v48  ;;  %v155_v35 = vmul.f32 0.020833334, %v523_v30 }
  0xb9   :  { %312 = vrsqrt.f32 %v221_v54  ;;  %v207_v63 = vmax.f32 %v191_v56, 0.0  ;;  %v206_v3 = vmax.f32 %v190_v57, 0.0  ;;  %v161_v4 = vmul.f32 0.020833334, %v109_v61  ;;  %v532_v57 = vld [vmem:[%s633_s1] ss:$0 sm:$0xff] }
  0xba   :  { %314 = vrsqrt.f32 %v220_v55  ;;  %v160_v7 = vmul.f32 0.020833334, %v106_v62  ;;  %v182_v56 = vmul.f32 %v150_v43, %v150_v43  ;;  %v184_v61 = vmul.f32 %v152_v18, %v152_v18 }
  0xbb   :  { %v223_v10 = vadd.f32 1e-05, %v207_v63  ;;  %v222_v32 = vadd.f32 1e-05, %v206_v3  ;;  %v193_v33 = vsub.f32 %v161_v4, %v177_v58 }
  0xbc   :  { %v192_v36 = vsub.f32 %v160_v7, %v176_v6  ;;  %v115_v37 = vpop.xlane.xlu1 %114  ;;  %v112_v38 = vpop.xlane.xlu0 %111 }
  0xbd   :  { %316 = vrsqrt.f32 %v223_v10  ;;  %v209_v14 = vmax.f32 %v193_v33, 0.0  ;;  %v163_v15 = vmul.f32 0.020833334, %v115_v37  ;;  %v162_v39 = vmul.f32 0.020833334, %v112_v38 }
  0xbe   :  { %318 = vrsqrt.f32 %v222_v32  ;;  %v208_v42 = vmax.f32 %v192_v36, 0.0 }
  0xbf   :  { %v225_v44 = vadd.f32 1e-05, %v209_v14  ;;  %v195_v45 = vsub.f32 %v163_v15, %v179_v11  ;;  %v194_v46 = vsub.f32 %v162_v39, %v178_v34  ;;  %v154_v14 = vmul.f32 0.020833334, %v525_v31 }
  0xc0   :  { %v224_v49 = vadd.f32 1e-05, %v208_v42  ;;  %v121_v50 = vpop.xlane.xlu1 %120  ;;  %v118_v51 = vpop.xlane.xlu0 %117 }
  0xc1   :  { %320 = vrsqrt.f32 %v225_v44  ;;  %v211_v52 = vmax.f32 %v195_v45, 0.0  ;;  %v210_v53 = vmax.f32 %v194_v46, 0.0  ;;  %v165_v54 = vmul.f32 0.020833334, %v121_v50 }
  0xc2   :  { %322 = vrsqrt.f32 %v224_v49  ;;  %v164_v55 = vmul.f32 0.020833334, %v118_v51  ;;  %v187_v46 = vmul.f32 %v155_v35, %v155_v35  ;;  %v186_v50 = vmul.f32 %v154_v14, %v154_v14 }
  0xc3   :  { %v313_v23 = vpop.eup %312  ;;  %v227_v26 = vadd.f32 1e-05, %v211_v52  ;;  %v226_v27 = vadd.f32 1e-05, %v210_v53  ;;  %v197_v58 = vsub.f32 %v165_v54, %v181_v47 }
  0xc4   :  { %v315_v59 = vpop.eup %314  ;;  %v254_v62 = vmul.f32 %v313_v23, %v381_v5  ;;  %v196_v63 = vsub.f32 %v164_v55, %v180_v19  ;;  %v127_v3 = vpop.xlane.xlu1 %126 }
  0xc5   :  { %v124_v4 = vpop.xlane.xlu0 %123  ;;  %v253_v6 = vmul.f32 %v315_v59, %v367_v1  ;;  %324 = vrsqrt.f32 %v227_v26  ;;  %v213_v7 = vmax.f32 %v197_v58, 0.0  ;;  %v167_v10 = vmul.f32 0.020833334, %v127_v3 }
  0xc6   :  { %v276_v32 = vmul.f32 %v532_v57, %v254_v62  ;;  %326 = vrsqrt.f32 %v226_v27  ;;  %v212_v33 = vmax.f32 %v196_v63, 0.0  ;;  %v166_v11 = vmul.f32 0.020833334, %v124_v4 }
  0xc7   :  { %v317_v34 = vpop.eup %316  ;;  %v275_v36 = vmul.f32 %v532_v57, %v253_v6  ;;  %v229_v37 = vadd.f32 1e-05, %v213_v7  ;;  %v199_v5 = vsub.f32 %v167_v10, %v183_v22 }
  0xc8   :  { %v319_v38 = vpop.eup %318  ;;  %292 = vst.msk [vmem:[%s634_s2 + $0x8] sm:$0xff] %vm27_vm0, %v276_v32  ;;  %v256_v1 = vmul.f32 %v317_v34, %v372_v2  ;;  %v228_v15 = vadd.f32 1e-05, %v212_v33  ;;  %v198_v39 = vsub.f32 %v166_v11, %v182_v56  ;;  %v133_v40 = vpop.xlane.xlu1 %132 }
  0xc9   :  { %v130_v41 = vpop.xlane.xlu0 %129  ;;  %291 = vst.msk [vmem:[%s634_s2] sm:$0xff] %vm27_vm0, %v275_v36  ;;  %v255_v30 = vmul.f32 %v319_v38, %v362_v0  ;;  %328 = vrsqrt.f32 %v229_v37  ;;  %v215_v31 = vmax.f32 %v199_v5, 0.0  ;;  %v169_v42 = vmul.f32 0.020833334, %v133_v40 }
  0xca   :  { %v278_v43 = vmul.f32 %v532_v57, %v256_v1  ;;  %330 = vrsqrt.f32 %v228_v15  ;;  %v214_v44 = vmax.f32 %v198_v39, 0.0  ;;  %v168_v45 = vmul.f32 0.020833334, %v130_v41 }
  0xcb   :  { %v321_v2 = vpop.eup %320  ;;  %v277_v47 = vmul.f32 %v532_v57, %v255_v30  ;;  %v231_v48 = vadd.f32 1e-05, %v215_v31  ;;  %v201_v18 = vsub.f32 %v169_v42, %v185_v60 }
  0xcc   :  { %v323_v49 = vpop.eup %322  ;;  %294 = vst.msk [vmem:[%s634_s2 + $0x18] sm:$0xff] %vm27_vm0, %v278_v43  ;;  %v258_v0 = vmul.f32 %v321_v2, %v390_v8  ;;  %v230_v51 = vadd.f32 1e-05, %v214_v44  ;;  %v200_v52 = vsub.f32 %v168_v45, %v184_v61  ;;  %v139_v53 = vpop.xlane.xlu1 %138 }
  0xcd   :  { %v136_v54 = vpop.xlane.xlu0 %135  ;;  %293 = vst.msk [vmem:[%s634_s2 + $0x10] sm:$0xff] %vm27_vm0, %v277_v47  ;;  %v257_v19 = vmul.f32 %v323_v49, %v395_v9  ;;  %332 = vrsqrt.f32 %v231_v48  ;;  %v217_v22 = vmax.f32 %v201_v18, 0.0  ;;  %v171_v55 = vmul.f32 0.020833334, %v139_v53 }
  0xce   :  { %v280_v23 = vmul.f32 %v532_v57, %v258_v0  ;;  %334 = vrsqrt.f32 %v230_v51  ;;  %v216_v56 = vmax.f32 %v200_v52, 0.0  ;;  %v170_v26 = vmul.f32 0.020833334, %v136_v54 }
  0xcf   :  { %v325_v8 = vpop.eup %324  ;;  %v279_v27 = vmul.f32 %v532_v57, %v257_v19  ;;  %v233_v58 = vadd.f32 1e-05, %v217_v22  ;;  %v203_v59 = vsub.f32 %v171_v55, %v187_v46 }
  0xd0   :  { %v327_v60 = vpop.eup %326  ;;  %296 = vst.msk [vmem:[%s634_s2 + $0x28] sm:$0xff] %vm27_vm0, %v280_v23  ;;  %v260_v9 = vmul.f32 %v325_v8, %v404_v12  ;;  %v232_v61 = vadd.f32 1e-05, %v216_v56  ;;  %v202_v62 = vsub.f32 %v170_v26, %v186_v50 }
  0xd1   :  { %295 = vst.msk [vmem:[%s634_s2 + $0x20] sm:$0xff] %vm27_vm0, %v279_v27  ;;  %v259_v63 = vmul.f32 %v327_v60, %v409_v13  ;;  %336 = vrsqrt.f32 %v233_v58  ;;  %v219_v3 = vmax.f32 %v203_v59, 0.0 }
  0xd2   :  { %v282_v4 = vmul.f32 %v532_v57, %v260_v9  ;;  %338 = vrsqrt.f32 %v232_v61  ;;  %v218_v6 = vmax.f32 %v202_v62, 0.0 }
  0xd3   :  { %v329_v7 = vpop.eup %328  ;;  %v281_v10 = vmul.f32 %v532_v57, %v259_v63  ;;  %v235_v32 = vadd.f32 1e-05, %v219_v3 }
  0xd4   :  { %v331_v12 = vpop.eup %330  ;;  %298 = vst.msk [vmem:[%s634_s2 + $0x38] sm:$0xff] %vm27_vm0, %v282_v4  ;;  %v262_v33 = vmul.f32 %v329_v7, %v418_v16  ;;  %v234_v11 = vadd.f32 1e-05, %v218_v6 }
  0xd5   :  { %297 = vst.msk [vmem:[%s634_s2 + $0x30] sm:$0xff] %vm27_vm0, %v281_v10  ;;  %v261_v13 = vmul.f32 %v331_v12, %v423_v17  ;;  %340 = vrsqrt.f32 %v235_v32 }
  0xd6   :  { %v284_v34 = vmul.f32 %v532_v57, %v262_v33  ;;  %342 = vrsqrt.f32 %v234_v11 }
  0xd7   :  { %v333_v35 = vpop.eup %332  ;;  %v283_v36 = vmul.f32 %v532_v57, %v261_v13 }
  0xd8   :  { %v335_v37 = vpop.eup %334  ;;  %300 = vst.msk [vmem:[%s634_s2 + $0x48] sm:$0xff] %vm27_vm0, %v284_v34  ;;  %v264_v16 = vmul.f32 %v333_v35, %v432_v20 }
  0xd9   :  { %299 = vst.msk [vmem:[%s634_s2 + $0x40] sm:$0xff] %vm27_vm0, %v283_v36  ;;  %v263_v17 = vmul.f32 %v335_v37, %v437_v21 }
  0xda   :  { %v286_v5 = vmul.f32 %v532_v57, %v264_v16 }
  0xdb   :  { %v337_v38 = vpop.eup %336  ;;  %v285_v14 = vmul.f32 %v532_v57, %v263_v17 }
  0xdc   :  { %v339_v1 = vpop.eup %338  ;;  %302 = vst.msk [vmem:[%s634_s2 + $0x58] sm:$0xff] %vm27_vm0, %v286_v5  ;;  %v266_v20 = vmul.f32 %v337_v38, %v446_v24 }
  0xdd   :  { %301 = vst.msk [vmem:[%s634_s2 + $0x50] sm:$0xff] %vm27_vm0, %v285_v14  ;;  %v265_v21 = vmul.f32 %v339_v1, %v451_v25 }
  0xde   :  { %v288_v15 = vmul.f32 %v532_v57, %v266_v20 }
  0xdf   :  { %v341_v39 = vpop.eup %340  ;;  %v287_v40 = vmul.f32 %v532_v57, %v265_v21 }
  0xe0   :  { %v343_v41 = vpop.eup %342  ;;  %304 = vst.msk [vmem:[%s634_s2 + $0x68] sm:$0xff] %vm27_vm0, %v288_v15  ;;  %v268_v24 = vmul.f32 %v341_v39, %v460_v28 }
  0xe1   :  { %303 = vst.msk [vmem:[%s634_s2 + $0x60] sm:$0xff] %vm27_vm0, %v287_v40  ;;  %v267_v25 = vmul.f32 %v343_v41, %v465_v29 }
  0xe2   :  { %v290_v30 = vmul.f32 %v532_v57, %v268_v24 }
  0xe3   :  { %v289_v31 = vmul.f32 %v532_v57, %v267_v25 }
  0xe4   :  { %306 = vst.msk [vmem:[%s634_s2 + $0x78] sm:$0xff] %vm27_vm0, %v290_v30 }
  0xe5   :  { %305 = vst.msk [vmem:[%s634_s2 + $0x70] sm:$0xff] %vm27_vm0, %v289_v31 }

</bundles_post_ra>
